<compile_context>
chip_gen: v7x
topology: tpu7x:2x2x1
jax: 0.10.0
libtpu: 0.0.40
codegen_flags: <defaults>
</compile_context>

<pallas_src>
import functools

import numpy as np
import jax
import jax.numpy as jnp
from jax import lax
from jax.experimental import pallas as pl
from jax.experimental.pallas import tpu as pltpu


def _round_up(v, m):
    return ((v + m - 1) // m) * m


# ---------------------------------------------------------------------------
# Kernel A: fused  relu -> Conv2d(k3,s2,p1) -> relu -> ConvTranspose2d(k3,s2,p1,op1)
#           + per-step BatchNorm partial sums.
#
# Input xf is the zero-padded, parity-decomposed, row-flattened activation:
#   xf[n, 2a+b, c, i*Wq + j] = pad(x_nhwc, 1)[n, 2i+a, 2j+b, c]    (i, j in [0, Wq))
# so every stride-2 tap of the down conv (and every shift of the up conv) is a
# contiguous static lane-slice.  Channels contract on the MXU, spatial positions
# (B_blk batch elements side by side, stride Lc) live in the lane axis.
#
# Outputs (per grid step g, batches [g*B_blk, (g+1)*B_blk)):
#   z_ref[g, q*Cout+co, n*Lc + m*Wq + p] = z[n, 2m+a, 2p+b, co]   (q = 2a+b, un-normalized)
#   zsum/zsq: per-step per-(parity, channel) sums of z and z^2 over the valid lanes.
# ---------------------------------------------------------------------------
def _make_fused_kernel(Cp, inner, B_blk, Lc, Ho, Wo, Wq, tail, mm_dtype):
    lanes = B_blk * Lc
    taps = [(ky, kx) for ky in range(3) for kx in range(3)]
    up_offs = (0, 1, Wq, Wq + 1)      # y shifts (0,0), (0,1), (1,0), (1,1)

    def kernel(xf_ref, wd_ref, wu_ref, z_ref, zsum_ref, zsq_ref, slab_ref, yp_ref):
        # (a) ReLU once per element on the resident tile (f32 on every chip).
        xs = jnp.maximum(xf_ref[...], 0.0)                       # (B_blk, 4, Cp, Lx)

        # (b) in-VMEM im2col slab: 9 taps stacked along the contraction (sublane)
        #     axis, batch elements side by side along lanes.  Pure lane-slices,
        #     no reshapes.
        for t, (ky, kx) in enumerate(taps):
            a, ra = ky % 2, ky // 2
            b, cb = kx % 2, kx // 2
            par = 2 * a + b
            off = ra * Wq + cb
            slab_ref[t * Cp:(t + 1) * Cp, :] = jnp.concatenate(
                [xs[n, par, :, off:off + Lc] for n in range(B_blk)], axis=1)

        # (c) down conv: ONE matmul, K = 9*Cp, spatial in lanes (f32 accumulation).
        y = jnp.dot(wd_ref[...], slab_ref[...].astype(mm_dtype),
                    preferred_element_type=jnp.float32)          # (inner, lanes)

        # (d) ReLU(y), zero the out-of-image / padded lanes, and stage into a
        #     scratch with `tail` spare lanes so the 4 up-conv shifts below are
        #     plain static lane-slices (no wrap-around ambiguity).
        pos = lax.broadcasted_iota(jnp.int32, (1, lanes), 1) % Lc
        valid = jnp.logical_and(pos % Wq != Wo, pos < Ho * Wq)   # (1, lanes)
        yp_ref[:, :lanes] = jnp.where(valid, jnp.maximum(y, 0.0), 0.0)
        # tail lanes only ever feed masked junk output lanes; scrub them anyway
        # (half a vreg) instead of a pl.when(step==0) so this stays correct even
        # if the "parallel" batch axis is sharded across TensorCores.
        yp_ref[:, lanes:] = jnp.zeros((inner, tail), jnp.float32)

        # (e) transposed conv: all 4 output parities in ONE matmul, K = 4*inner.
        ys = jnp.concatenate([yp_ref[:, off:off + lanes] for off in up_offs],
                             axis=0)                             # (4*inner, lanes)
        z = jnp.dot(wu_ref[...], ys.astype(mm_dtype),
                    preferred_element_type=jnp.float32)          # (4*Cout, lanes)

        # (f) clean the junk lanes once, store lane-dense, emit BN partial sums.
        zm = jnp.where(valid, z, 0.0)
        z_ref[0] = zm
        zsum_ref[0] = jnp.sum(zm, axis=1, keepdims=True)
        zsq_ref[0] = jnp.sum(zm * zm, axis=1, keepdims=True)

    return kernel


# ---------------------------------------------------------------------------
# Kernel B: BatchNorm affine + skip concatenation (batch-blocked, 256-lane IO,
# per-channel scale/shift scalars held in SMEM).
# ---------------------------------------------------------------------------
def _make_bn_concat_kernel(Cin, Cout):
    def kernel(scale_ref, shift_ref, x_ref, z_ref, o_ref):
        o_ref[:, :Cin, :] = x_ref[...]                           # skip connection
        zn = jnp.concatenate(
            [z_ref[:, co:co + 1, :] * scale_ref[co] + shift_ref[co]
             for co in range(Cout)], axis=1)
        o_ref[:, Cin:, :] = zn
    return kernel


# ---------------------------------------------------------------------------
# SegV2Block (innermost) forward
# ---------------------------------------------------------------------------
def seg_v2_block_forward(x_nchw, w_down_pt, w_up_pt, gamma, beta, eps=1e-5,
                         matmul_dtype=jnp.float32, batch_block=None):
    N, Cin, H, W = x_nchw.shape
    inner = w_down_pt.shape[0]
    Cout = w_up_pt.shape[1]
    assert H % 2 == 0 and W % 2 == 0
    Ho, Wo = H // 2, W // 2
    Hq, Wq = Ho + 1, Wo + 1
    Cp = _round_up(Cin, 8)                 # pad contraction channels
    HW = H * W
    Ctot = Cin + Cout
    f32 = jnp.float32
    mm = matmul_dtype

    # per-batch lane chunk (lane-group aligned) and input plane length with
    # enough head-room for the +1 / +Wq / +Wq+1 tap shifts.
    Lc = _round_up(Ho * Wq, 128)
    Lx = _round_up(Lc + Wq + 1, 8)
    tail = _round_up(Wq + 1, 8)

    # Batch blocking: B_blk batch elements share one grid step (side by side in
    # the lane axis).  NOTE(v7x): keep N // B_blk >= 2 so both TensorCores are
    # used (pass batch_block=N//2 there); v5e/v6e are single-TC.
    B_blk = batch_block if batch_block is not None else (2 if N % 2 == 0 else 1)
    assert N % B_blk == 0
    G = N // B_blk
    lanes = B_blk * Lc

    x_nchw = x_nchw.astype(f32)

    # ---- XLA prep: pad + parity-decompose + row-flatten x (pure data movement) ----
    x_nhwc = jnp.transpose(x_nchw, (0, 2, 3, 1))
    xp = jnp.pad(x_nhwc, ((0, 0), (1, 1), (1, 1), (0, Cp - Cin)))     # (N,2Hq,2Wq,Cp)
    xq = xp.reshape(N, Hq, 2, Wq, 2, Cp)                              # (n,i,a,j,b,c)
    xq = jnp.transpose(xq, (0, 2, 4, 5, 1, 3)).reshape(N, 4, Cp, Hq * Wq)
    xf = jnp.pad(xq, ((0, 0), (0, 0), (0, 0), (0, Lx - Hq * Wq)))     # (N,4,Cp,Lx)

    # ---- weights -> matmul-ready 2-D operands (no in-kernel weight reshapes) ----
    wd_big = jnp.pad(jnp.transpose(w_down_pt, (0, 2, 3, 1)).astype(f32),
                     ((0, 0), (0, 0), (0, 0), (0, Cp - Cin)))
    wd_big = wd_big.reshape(inner, 9 * Cp).astype(mm)                 # (inner, 9*Cp)

    wu_t = jnp.transpose(w_up_pt, (1, 0, 2, 3)).astype(f32)           # (Cout, inner, 3, 3)
    zero_blk = jnp.zeros((Cout, inner), f32)
    # (output-parity row block, y-shift col block) -> ConvTranspose tap (ky, kx)
    spec = {(0, 0): (1, 1),
            (1, 1): (1, 0), (1, 0): (1, 2),
            (2, 2): (0, 1), (2, 0): (2, 1),
            (3, 3): (0, 0), (3, 2): (0, 2), (3, 1): (2, 0), (3, 0): (2, 2)}

    def _wu_block(q, s):
        if (q, s) in spec:
            ky, kx = spec[(q, s)]
            return wu_t[:, :, ky, kx]
        return zero_blk

    wu_big = jnp.concatenate(
        [jnp.concatenate([_wu_block(q, s) for s in range(4)], axis=1)
         for q in range(4)], axis=0).astype(mm)                       # (4*Cout, 4*inner)

    # ---- kernel A: fused conv path + BN partial sums (batch-blocked, parallel) ----
    flops = 2 * N * Lc * (9 * Cp * inner + (4 * inner) * (4 * Cout))
    bytes_accessed = 4 * (xf.size + G * (4 * Cout) * (lanes + 2)) \
        + 4 * (wd_big.size + wu_big.size)
    z_out, z_sum, z_sq = pl.pallas_call(
        _make_fused_kernel(Cp, inner, B_blk, Lc, Ho, Wo, Wq, tail, mm),
        grid=(G,),
        in_specs=[
            pl.BlockSpec((B_blk, 4, Cp, Lx), lambda g: (g, 0, 0, 0)),
            pl.BlockSpec((inner, 9 * Cp), lambda g: (0, 0)),
            pl.BlockSpec((4 * Cout, 4 * inner), lambda g: (0, 0)),
        ],
        out_specs=[
            pl.BlockSpec((1, 4 * Cout, lanes), lambda g: (g, 0, 0)),
            pl.BlockSpec((1, 4 * Cout, 1), lambda g: (g, 0, 0)),
            pl.BlockSpec((1, 4 * Cout, 1), lambda g: (g, 0, 0)),
        ],
        out_shape=[
            jax.ShapeDtypeStruct((G, 4 * Cout, lanes), f32),
            jax.ShapeDtypeStruct((G, 4 * Cout, 1), f32),
            jax.ShapeDtypeStruct((G, 4 * Cout, 1), f32),
        ],
        scratch_shapes=[
            pltpu.VMEM((9 * Cp, lanes), f32),        # in-VMEM im2col slab (down conv)
            pltpu.VMEM((inner, lanes + tail), f32),  # relu(y) staging + shift head-room
        ],
        # Resident per step: xf block + slab + yp + z block  (well under any VMEM
        # budget at these sizes; re-derive before enlarging B_blk/H/W on v7x's 64 MiB).
        compiler_params=pltpu.CompilerParams(dimension_semantics=("parallel",)),
        cost_estimate=pl.CostEstimate(flops=flops, transcendentals=0,
                                      bytes_accessed=bytes_accessed),
    )(xf, wd_big, wu_big)

    # ---- finish BatchNorm statistics (a few scalars; trivial XLA glue) ----------
    count = N * H * W
    s1 = jnp.sum(z_sum.reshape(G, 4, Cout), axis=(0, 1))
    s2 = jnp.sum(z_sq.reshape(G, 4, Cout), axis=(0, 1))
    mean = s1 / count
    var = s2 / count - mean * mean          # biased var (PyTorch training-mode BN)
    inv = gamma.astype(f32) * lax.rsqrt(var + eps)
    scale = inv                             # (Cout,)
    shift = beta.astype(f32) - mean * inv   # (Cout,)

    # ---- parity re-interleave of z back to NCHW order (tiny; XLA glue) ----------
    zz = z_out.reshape(G, 2, 2, Cout, B_blk, Lc)[..., :Ho * Wq]
    zz = zz.reshape(G, 2, 2, Cout, B_blk, Ho, Wq)[..., :Wo]           # (g,a,b,co,nl,m,p)
    z2 = jnp.transpose(zz, (0, 4, 3, 5, 1, 6, 2)).reshape(N, Cout, HW)
    x2 = x_nchw.reshape(N, Cin, HW)

    # ---- kernel B: BN affine + skip concat, batch-blocked, 256-lane stores ------
    out2 = pl.pallas_call(
        _make_bn_concat_kernel(Cin, Cout),
        grid=(G,),
        in_specs=[
            pl.BlockSpec(memory_space=pltpu.MemorySpace.SMEM),       # scale (Cout,)
            pl.BlockSpec(memory_space=pltpu.MemorySpace.SMEM),       # shift (Cout,)
            pl.BlockSpec((B_blk, Cin, HW), lambda g: (g, 0, 0)),
            pl.BlockSpec((B_blk, Cout, HW), lambda g: (g, 0, 0)),
        ],
        out_specs=pl.BlockSpec((B_blk, Ctot, HW), lambda g: (g, 0, 0)),
        out_shape=jax.ShapeDtypeStruct((N, Ctot, HW), f32),
        compiler_params=pltpu.CompilerParams(dimension_semantics=("parallel",)),
    )(scale, shift, x2, z2)

    return out2.reshape(N, Ctot, H, W)


# ---------------------------------------------------------------------------
# Pure-JAX (XLA) reference for verification
# ---------------------------------------------------------------------------
def reference_forward(x_nchw, w_down_pt, w_up_pt, gamma, beta, eps=1e-5):
    x = jnp.transpose(x_nchw, (0, 2, 3, 1))
    xr = jnp.maximum(x, 0.0)
    w_down_hwio = jnp.transpose(w_down_pt, (2, 3, 1, 0))              # (3,3,Cin,inner)
    y = lax.conv_general_dilated(
        xr, w_down_hwio, (2, 2), ((1, 1), (1, 1)),
        dimension_numbers=("NHWC", "HWIO", "NHWC"))
    yr = jnp.maximum(y, 0.0)
    w_up_hwio = jnp.transpose(jnp.flip(w_up_pt, (2, 3)), (2, 3, 0, 1))
    z = lax.conv_general_dilated(
        yr, w_up_hwio, (1, 1), ((1, 2), (1, 2)), lhs_dilation=(2, 2),
        dimension_numbers=("NHWC", "HWIO", "NHWC"))
    mean = z.mean((0, 1, 2))
    var = jnp.square(z - mean).mean((0, 1, 2))
    z = (z - mean) * lax.rsqrt(var + eps) * gamma + beta
    return jnp.concatenate([x_nchw, jnp.transpose(z, (0, 3, 1, 2))], axis=1)


# ---------------------------------------------------------------------------
# main
# ---------------------------------------------------------------------------
if __name__ == "__main__":
    N, H, W = 2, 16, 16
    outer_nc, inner_nc = 4, 8
    input_nc = outer_nc              # input_nc=None -> input_nc = outer_nc

    key = jax.random.PRNGKey(0)
    k_x, k_d, k_u = jax.random.split(key, 3)

    x = jax.random.normal(k_x, (N, input_nc, H, W), dtype=jnp.float32)
    # PyTorch weight layouts
    w_down_pt = 0.1 * jax.random.normal(k_d, (inner_nc, input_nc, 3, 3), jnp.float32)
    w_up_pt = 0.1 * jax.random.normal(k_u, (inner_nc, outer_nc, 3, 3), jnp.float32)
    gamma = jnp.ones((outer_nc,), jnp.float32)    # BatchNorm default init
    beta = jnp.zeros((outer_nc,), jnp.float32)

    ref = jax.block_until_ready(reference_forward(x, w_down_pt, w_up_pt, gamma, beta))

    # f32 MXU-operand path (exact-ish; 1e-3 check against the XLA reference).
    fwd_f32 = jax.jit(functools.partial(seg_v2_block_forward, matmul_dtype=jnp.float32))
    out = jax.block_until_ready(fwd_f32(x, w_down_pt, w_up_pt, gamma, beta))
    assert out.shape == (N, input_nc + outer_nc, H, W), out.shape
    np.testing.assert_allclose(np.asarray(out), np.asarray(ref), atol=1e-3, rtol=1e-3)

    # bf16 MXU-operand path (the v6e/v7x perf option; f32 accumulation, f32 VPU math).
    # Tolerance reflects bf16 operand rounding only.
    fwd_bf16 = jax.jit(functools.partial(seg_v2_block_forward, matmul_dtype=jnp.bfloat16))
    out_bf = jax.block_until_ready(fwd_bf16(x, w_down_pt, w_up_pt, gamma, beta))
    np.testing.assert_allclose(np.asarray(out_bf), np.asarray(ref), atol=5e-2, rtol=5e-2)

    print("KERNEL_OK")
</pallas_src>

<mosaic_0001>
module attributes {stable_mosaic.version = 11 : i64} {
  func.func @kernel(%arg0: i32, %arg1: memref<2x4x8x144xf32, #tpu.memory_space<vmem>>, %arg2: memref<8x72xf32, #tpu.memory_space<vmem>>, %arg3: memref<16x32xf32, #tpu.memory_space<vmem>>, %arg4: memref<1x16x256xf32, #tpu.memory_space<vmem>>, %arg5: memref<1x16x1xf32, #tpu.memory_space<vmem>>, %arg6: memref<1x16x1xf32, #tpu.memory_space<vmem>>, %arg7: memref<72x256xf32, #tpu.memory_space<vmem>>, %arg8: memref<8x272xf32, #tpu.memory_space<vmem>>) attributes {dimension_semantics = [#tpu.dimension_semantics<parallel>], iteration_bounds = array<i64: 1>, scalar_prefetch = 0 : i64, scratch_operands = 2 : i64, tpu.core_type = #tpu.core_type<tc>, window_params = [{transform_indices = @transform_0, window_bounds = array<i64: 2, 4, 8, 144>}, {pipeline_mode = #tpu.pipeline_mode<synchronous>, transform_indices = @transform_1, window_bounds = array<i64: 8, 72>}, {pipeline_mode = #tpu.pipeline_mode<synchronous>, transform_indices = @transform_2, window_bounds = array<i64: 16, 32>}, {transform_indices = @transform_3, window_bounds = array<i64: 1, 16, 256>}, {transform_indices = @transform_4, window_bounds = array<i64: 1, 16, 1>}, {transform_indices = @transform_5, window_bounds = array<i64: 1, 16, 1>}]} {
    %c0 = arith.constant 0 : index
    %c0_0 = arith.constant 0 : index
    %c0_1 = arith.constant 0 : index
    %c0_2 = arith.constant 0 : index
    %0 = vector.load %arg1[%c0, %c0_0, %c0_1, %c0_2] : memref<2x4x8x144xf32, #tpu.memory_space<vmem>>, vector<2x4x8x144xf32>
    %cst = arith.constant 0.000000e+00 : f32
    %1 = vector.broadcast %cst : f32 to vector<2x4x8x144xf32>
    %2 = arith.maximumf %0, %1 : vector<2x4x8x144xf32>
    %3 = vector.extract_strided_slice %2 {offsets = [0, 0, 0, 0], sizes = [1, 1, 8, 128], strides = [1, 1, 1, 1]} : vector<2x4x8x144xf32> to vector<1x1x8x128xf32>
    %4 = vector.shape_cast %3 : vector<1x1x8x128xf32> to vector<8x128xf32>
    %5 = vector.extract_strided_slice %2 {offsets = [1, 0, 0, 0], sizes = [1, 1, 8, 128], strides = [1, 1, 1, 1]} : vector<2x4x8x144xf32> to vector<1x1x8x128xf32>
    %6 = vector.shape_cast %5 : vector<1x1x8x128xf32> to vector<8x128xf32>
    %7 = tpu.concatenate %4, %6 in 1 : vector<8x128xf32>, vector<8x128xf32> -> vector<8x256xf32>
    %c0_3 = arith.constant 0 : index
    %c0_4 = arith.constant 0 : index
    %8 = vector.load %arg7[%c0_3, %c0_4] : memref<72x256xf32, #tpu.memory_space<vmem>>, vector<8x256xf32>
    tpu.vector_store %arg7[%c0_3, %c0_4], %7 {strides = array<i32>} : memref<72x256xf32, #tpu.memory_space<vmem>>, vector<8x256xf32>,
    %9 = vector.extract_strided_slice %2 {offsets = [0, 1, 0, 0], sizes = [1, 1, 8, 128], strides = [1, 1, 1, 1]} : vector<2x4x8x144xf32> to vector<1x1x8x128xf32>
    %10 = vector.shape_cast %9 : vector<1x1x8x128xf32> to vector<8x128xf32>
    %11 = vector.extract_strided_slice %2 {offsets = [1, 1, 0, 0], sizes = [1, 1, 8, 128], strides = [1, 1, 1, 1]} : vector<2x4x8x144xf32> to vector<1x1x8x128xf32>
    %12 = vector.shape_cast %11 : vector<1x1x8x128xf32> to vector<8x128xf32>
    %13 = tpu.concatenate %10, %12 in 1 : vector<8x128xf32>, vector<8x128xf32> -> vector<8x256xf32>
    %c8 = arith.constant 8 : index
    %c0_5 = arith.constant 0 : index
    %14 = vector.load %arg7[%c8, %c0_5] : memref<72x256xf32, #tpu.memory_space<vmem>>, vector<8x256xf32>
    tpu.vector_store %arg7[%c8, %c0_5], %13 {strides = array<i32>} : memref<72x256xf32, #tpu.memory_space<vmem>>, vector<8x256xf32>,
    %15 = vector.extract_strided_slice %2 {offsets = [0, 0, 0, 1], sizes = [1, 1, 8, 128], strides = [1, 1, 1, 1]} : vector<2x4x8x144xf32> to vector<1x1x8x128xf32>
    %16 = vector.shape_cast %15 : vector<1x1x8x128xf32> to vector<8x128xf32>
    %17 = vector.extract_strided_slice %2 {offsets = [1, 0, 0, 1], sizes = [1, 1, 8, 128], strides = [1, 1, 1, 1]} : vector<2x4x8x144xf32> to vector<1x1x8x128xf32>
    %18 = vector.shape_cast %17 : vector<1x1x8x128xf32> to vector<8x128xf32>
    %19 = tpu.concatenate %16, %18 in 1 : vector<8x128xf32>, vector<8x128xf32> -> vector<8x256xf32>
    %c16 = arith.constant 16 : index
    %c0_6 = arith.constant 0 : index
    %20 = vector.load %arg7[%c16, %c0_6] : memref<72x256xf32, #tpu.memory_space<vmem>>, vector<8x256xf32>
    tpu.vector_store %arg7[%c16, %c0_6], %19 {strides = array<i32>} : memref<72x256xf32, #tpu.memory_space<vmem>>, vector<8x256xf32>,
    %21 = vector.extract_strided_slice %2 {offsets = [0, 2, 0, 0], sizes = [1, 1, 8, 128], strides = [1, 1, 1, 1]} : vector<2x4x8x144xf32> to vector<1x1x8x128xf32>
    %22 = vector.shape_cast %21 : vector<1x1x8x128xf32> to vector<8x128xf32>
    %23 = vector.extract_strided_slice %2 {offsets = [1, 2, 0, 0], sizes = [1, 1, 8, 128], strides = [1, 1, 1, 1]} : vector<2x4x8x144xf32> to vector<1x1x8x128xf32>
    %24 = vector.shape_cast %23 : vector<1x1x8x128xf32> to vector<8x128xf32>
    %25 = tpu.concatenate %22, %24 in 1 : vector<8x128xf32>, vector<8x128xf32> -> vector<8x256xf32>
    %c24 = arith.constant 24 : index
    %c0_7 = arith.constant 0 : index
    %26 = vector.load %arg7[%c24, %c0_7] : memref<72x256xf32, #tpu.memory_space<vmem>>, vector<8x256xf32>
    tpu.vector_store %arg7[%c24, %c0_7], %25 {strides = array<i32>} : memref<72x256xf32, #tpu.memory_space<vmem>>, vector<8x256xf32>,
    %27 = vector.extract_strided_slice %2 {offsets = [0, 3, 0, 0], sizes = [1, 1, 8, 128], strides = [1, 1, 1, 1]} : vector<2x4x8x144xf32> to vector<1x1x8x128xf32>
    %28 = vector.shape_cast %27 : vector<1x1x8x128xf32> to vector<8x128xf32>
    %29 = vector.extract_strided_slice %2 {offsets = [1, 3, 0, 0], sizes = [1, 1, 8, 128], strides = [1, 1, 1, 1]} : vector<2x4x8x144xf32> to vector<1x1x8x128xf32>
    %30 = vector.shape_cast %29 : vector<1x1x8x128xf32> to vector<8x128xf32>
    %31 = tpu.concatenate %28, %30 in 1 : vector<8x128xf32>, vector<8x128xf32> -> vector<8x256xf32>
    %c32 = arith.constant 32 : index
    %c0_8 = arith.constant 0 : index
    %32 = vector.load %arg7[%c32, %c0_8] : memref<72x256xf32, #tpu.memory_space<vmem>>, vector<8x256xf32>
    tpu.vector_store %arg7[%c32, %c0_8], %31 {strides = array<i32>} : memref<72x256xf32, #tpu.memory_space<vmem>>, vector<8x256xf32>,
    %33 = vector.extract_strided_slice %2 {offsets = [0, 2, 0, 1], sizes = [1, 1, 8, 128], strides = [1, 1, 1, 1]} : vector<2x4x8x144xf32> to vector<1x1x8x128xf32>
    %34 = vector.shape_cast %33 : vector<1x1x8x128xf32> to vector<8x128xf32>
    %35 = vector.extract_strided_slice %2 {offsets = [1, 2, 0, 1], sizes = [1, 1, 8, 128], strides = [1, 1, 1, 1]} : vector<2x4x8x144xf32> to vector<1x1x8x128xf32>
    %36 = vector.shape_cast %35 : vector<1x1x8x128xf32> to vector<8x128xf32>
    %37 = tpu.concatenate %34, %36 in 1 : vector<8x128xf32>, vector<8x128xf32> -> vector<8x256xf32>
    %c40 = arith.constant 40 : index
    %c0_9 = arith.constant 0 : index
    %38 = vector.load %arg7[%c40, %c0_9] : memref<72x256xf32, #tpu.memory_space<vmem>>, vector<8x256xf32>
    tpu.vector_store %arg7[%c40, %c0_9], %37 {strides = array<i32>} : memref<72x256xf32, #tpu.memory_space<vmem>>, vector<8x256xf32>,
    %39 = vector.extract_strided_slice %2 {offsets = [0, 0, 0, 9], sizes = [1, 1, 8, 128], strides = [1, 1, 1, 1]} : vector<2x4x8x144xf32> to vector<1x1x8x128xf32>
    %40 = vector.shape_cast %39 : vector<1x1x8x128xf32> to vector<8x128xf32>
    %41 = vector.extract_strided_slice %2 {offsets = [1, 0, 0, 9], sizes = [1, 1, 8, 128], strides = [1, 1, 1, 1]} : vector<2x4x8x144xf32> to vector<1x1x8x128xf32>
    %42 = vector.shape_cast %41 : vector<1x1x8x128xf32> to vector<8x128xf32>
    %43 = tpu.concatenate %40, %42 in 1 : vector<8x128xf32>, vector<8x128xf32> -> vector<8x256xf32>
    %c48 = arith.constant 48 : index
    %c0_10 = arith.constant 0 : index
    %44 = vector.load %arg7[%c48, %c0_10] : memref<72x256xf32, #tpu.memory_space<vmem>>, vector<8x256xf32>
    tpu.vector_store %arg7[%c48, %c0_10], %43 {strides = array<i32>} : memref<72x256xf32, #tpu.memory_space<vmem>>, vector<8x256xf32>,
    %45 = vector.extract_strided_slice %2 {offsets = [0, 1, 0, 9], sizes = [1, 1, 8, 128], strides = [1, 1, 1, 1]} : vector<2x4x8x144xf32> to vector<1x1x8x128xf32>
    %46 = vector.shape_cast %45 : vector<1x1x8x128xf32> to vector<8x128xf32>
    %47 = vector.extract_strided_slice %2 {offsets = [1, 1, 0, 9], sizes = [1, 1, 8, 128], strides = [1, 1, 1, 1]} : vector<2x4x8x144xf32> to vector<1x1x8x128xf32>
    %48 = vector.shape_cast %47 : vector<1x1x8x128xf32> to vector<8x128xf32>
    %49 = tpu.concatenate %46, %48 in 1 : vector<8x128xf32>, vector<8x128xf32> -> vector<8x256xf32>
    %c56 = arith.constant 56 : index
    %c0_11 = arith.constant 0 : index
    %50 = vector.load %arg7[%c56, %c0_11] : memref<72x256xf32, #tpu.memory_space<vmem>>, vector<8x256xf32>
    tpu.vector_store %arg7[%c56, %c0_11], %49 {strides = array<i32>} : memref<72x256xf32, #tpu.memory_space<vmem>>, vector<8x256xf32>,
    %51 = vector.extract_strided_slice %2 {offsets = [0, 0, 0, 10], sizes = [1, 1, 8, 128], strides = [1, 1, 1, 1]} : vector<2x4x8x144xf32> to vector<1x1x8x128xf32>
    %52 = vector.shape_cast %51 : vector<1x1x8x128xf32> to vector<8x128xf32>
    %53 = vector.extract_strided_slice %2 {offsets = [1, 0, 0, 10], sizes = [1, 1, 8, 128], strides = [1, 1, 1, 1]} : vector<2x4x8x144xf32> to vector<1x1x8x128xf32>
    %54 = vector.shape_cast %53 : vector<1x1x8x128xf32> to vector<8x128xf32>
    %55 = tpu.concatenate %52, %54 in 1 : vector<8x128xf32>, vector<8x128xf32> -> vector<8x256xf32>
    %c64 = arith.constant 64 : index
    %c0_12 = arith.constant 0 : index
    %56 = vector.load %arg7[%c64, %c0_12] : memref<72x256xf32, #tpu.memory_space<vmem>>, vector<8x256xf32>
    tpu.vector_store %arg7[%c64, %c0_12], %55 {strides = array<i32>} : memref<72x256xf32, #tpu.memory_space<vmem>>, vector<8x256xf32>,
    %c0_13 = arith.constant 0 : index
    %c0_14 = arith.constant 0 : index
    %57 = vector.load %arg2[%c0_13, %c0_14] : memref<8x72xf32, #tpu.memory_space<vmem>>, vector<8x72xf32>
    %c0_15 = arith.constant 0 : index
    %c0_16 = arith.constant 0 : index
    %58 = vector.load %arg7[%c0_15, %c0_16] : memref<72x256xf32, #tpu.memory_space<vmem>>, vector<72x256xf32>
    %cst_17 = arith.constant dense<0.000000e+00> : vector<8x256xf32>
    %59 = tpu.matmul %57, %58, %cst_17 {dimension_numbers = #tpu.dot_dimension_numbers<[1], [0], [0], [1], [0, 0, 1, 1], [], []>} : vector<8x72xf32>, vector<72x256xf32>, vector<8x256xf32> -> vector<8x256xf32>
    %60 = tpu.iota {dimensions = array<i32: 1>} : vector<1x256xi32>
    %c128_i32 = arith.constant 128 : i32
    %c0_i32 = arith.constant 0 : i32
    %61 = arith.cmpi eq, %c128_i32, %c0_i32 : i32
    %c1_i32 = arith.constant 1 : i32
    %62 = arith.select %61, %c1_i32, %c128_i32 : i32
    %63 = vector.broadcast %62 : i32 to vector<1x256xi32>
    %64 = arith.remsi %60, %63 : vector<1x256xi32>
    %c0_i32_18 = arith.constant 0 : i32
    %65 = vector.broadcast %c0_i32_18 : i32 to vector<1x256xi32>
    %66 = arith.cmpi ne, %64, %65 : vector<1x256xi32>
    %c0_i32_19 = arith.constant 0 : i32
    %67 = vector.broadcast %c0_i32_19 : i32 to vector<1x256xi32>
    %68 = arith.cmpi slt, %64, %67 : vector<1x256xi32>
    %c0_i32_20 = arith.constant 0 : i32
    %69 = arith.cmpi slt, %62, %c0_i32_20 : i32
    %70 = vector.broadcast %69 : i1 to vector<1x256xi1>
    %71 = vector.broadcast %70 : vector<1x256xi1> to vector<1x256xi1>
    %72 = arith.xori %68, %71 : vector<1x256xi1>
    %73 = arith.andi %72, %66 : vector<1x256xi1>
    %74 = vector.broadcast %62 : i32 to vector<1x256xi32>
    %75 = arith.addi %64, %74 : vector<1x256xi32>
    %76 = arith.select %73, %75, %64 : vector<1x256xi1>, vector<1x256xi32>
    %c9_i32 = arith.constant 9 : i32
    %c0_i32_21 = arith.constant 0 : i32
    %77 = arith.cmpi eq, %c9_i32, %c0_i32_21 : i32
    %c1_i32_22 = arith.constant 1 : i32
    %78 = arith.select %77, %c1_i32_22, %c9_i32 : i32
    %79 = vector.broadcast %78 : i32 to vector<1x256xi32>
    %80 = arith.remsi %76, %79 : vector<1x256xi32>
    %c0_i32_23 = arith.constant 0 : i32
    %81 = vector.broadcast %c0_i32_23 : i32 to vector<1x256xi32>
    %82 = arith.cmpi ne, %80, %81 : vector<1x256xi32>
    %c0_i32_24 = arith.constant 0 : i32
    %83 = vector.broadcast %c0_i32_24 : i32 to vector<1x256xi32>
    %84 = arith.cmpi slt, %80, %83 : vector<1x256xi32>
    %c0_i32_25 = arith.constant 0 : i32
    %85 = arith.cmpi slt, %78, %c0_i32_25 : i32
    %86 = vector.broadcast %85 : i1 to vector<1x256xi1>
    %87 = vector.broadcast %86 : vector<1x256xi1> to vector<1x256xi1>
    %88 = arith.xori %84, %87 : vector<1x256xi1>
    %89 = arith.andi %88, %82 : vector<1x256xi1>
    %90 = vector.broadcast %78 : i32 to vector<1x256xi32>
    %91 = arith.addi %80, %90 : vector<1x256xi32>
    %92 = arith.select %89, %91, %80 : vector<1x256xi1>, vector<1x256xi32>
    %c8_i32 = arith.constant 8 : i32
    %93 = vector.broadcast %c8_i32 : i32 to vector<1x256xi32>
    %94 = arith.cmpi ne, %92, %93 : vector<1x256xi32>
    %c72_i32 = arith.constant 72 : i32
    %95 = vector.broadcast %c72_i32 : i32 to vector<1x256xi32>
    %96 = arith.cmpi slt, %76, %95 : vector<1x256xi32>
    %97 = arith.andi %94, %96 : vector<1x256xi1>
    %cst_26 = arith.constant 0.000000e+00 : f32
    %98 = vector.broadcast %cst_26 : f32 to vector<8x256xf32>
    %99 = arith.maximumf %59, %98 : vector<8x256xf32>
    %cst_27 = arith.constant 0.000000e+00 : f32
    %100 = vector.shape_cast %97 : vector<1x256xi1> to vector<1x256xi1>
    %101 = vector.broadcast %100 : vector<1x256xi1> to vector<8x256xi1>
    %102 = vector.broadcast %cst_27 : f32 to vector<8x256xf32>
    %103 = arith.select %101, %99, %102 : vector<8x256xi1>, vector<8x256xf32>
    %c0_28 = arith.constant 0 : index
    %c0_29 = arith.constant 0 : index
    %104 = vector.load %arg8[%c0_28, %c0_29] : memref<8x272xf32, #tpu.memory_space<vmem>>, vector<8x256xf32>
    tpu.vector_store %arg8[%c0_28, %c0_29], %103 {strides = array<i32>} : memref<8x272xf32, #tpu.memory_space<vmem>>, vector<8x256xf32>,
    %cst_30 = arith.constant 0.000000e+00 : f32
    %105 = vector.broadcast %cst_30 : f32 to vector<8x16xf32>
    %c0_31 = arith.constant 0 : index
    %c256 = arith.constant 256 : index
    %106 = vector.load %arg8[%c0_31, %c256] : memref<8x272xf32, #tpu.memory_space<vmem>>, vector<8x16xf32>
    tpu.vector_store %arg8[%c0_31, %c256], %105 {strides = array<i32>} : memref<8x272xf32, #tpu.memory_space<vmem>>, vector<8x16xf32>,
    %c0_32 = arith.constant 0 : index
    %c0_33 = arith.constant 0 : index
    %107 = vector.load %arg8[%c0_32, %c0_33] : memref<8x272xf32, #tpu.memory_space<vmem>>, vector<8x256xf32>
    %c0_34 = arith.constant 0 : index
    %c1 = arith.constant 1 : index
    %108 = vector.load %arg8[%c0_34, %c1] : memref<8x272xf32, #tpu.memory_space<vmem>>, vector<8x256xf32>
    %c0_35 = arith.constant 0 : index
    %c9 = arith.constant 9 : index
    %109 = vector.load %arg8[%c0_35, %c9] : memref<8x272xf32, #tpu.memory_space<vmem>>, vector<8x256xf32>
    %c0_36 = arith.constant 0 : index
    %c10 = arith.constant 10 : index
    %110 = vector.load %arg8[%c0_36, %c10] : memref<8x272xf32, #tpu.memory_space<vmem>>, vector<8x256xf32>
    %111 = tpu.concatenate %107, %108, %109, %110 in 0 : vector<8x256xf32>, vector<8x256xf32>, vector<8x256xf32>, vector<8x256xf32> -> vector<32x256xf32>
    %c0_37 = arith.constant 0 : index
    %c0_38 = arith.constant 0 : index
    %112 = vector.load %arg3[%c0_37, %c0_38] : memref<16x32xf32, #tpu.memory_space<vmem>>, vector<16x32xf32>
    %cst_39 = arith.constant dense<0.000000e+00> : vector<16x256xf32>
    %113 = tpu.matmul %112, %111, %cst_39 {dimension_numbers = #tpu.dot_dimension_numbers<[1], [0], [0], [1], [0, 0, 1, 1], [], []>} : vector<16x32xf32>, vector<32x256xf32>, vector<16x256xf32> -> vector<16x256xf32>
    %cst_40 = arith.constant 0.000000e+00 : f32
    %114 = vector.shape_cast %97 : vector<1x256xi1> to vector<1x256xi1>
    %115 = vector.broadcast %114 : vector<1x256xi1> to vector<16x256xi1>
    %116 = vector.broadcast %cst_40 : f32 to vector<16x256xf32>
    %117 = arith.select %115, %113, %116 : vector<16x256xi1>, vector<16x256xf32>
    %c0_41 = arith.constant 0 : index
    %c0_42 = arith.constant 0 : index
    %c0_43 = arith.constant 0 : index
    %118 = vector.load %arg4[%c0_41, %c0_42, %c0_43] : memref<1x16x256xf32, #tpu.memory_space<vmem>>, vector<1x16x256xf32>
    %119 = vector.shape_cast %118 : vector<1x16x256xf32> to vector<16x256xf32>
    %120 = vector.shape_cast %117 : vector<16x256xf32> to vector<1x16x256xf32>
    tpu.vector_store %arg4[%c0_41, %c0_42, %c0_43], %120 {strides = array<i32>} : memref<1x16x256xf32, #tpu.memory_space<vmem>>, vector<1x16x256xf32>,
    %cst_44 = arith.constant dense<0.000000e+00> : vector<16xf32>
    %121 = vector.multi_reduction <add>, %117, %cst_44 [1] : vector<16x256xf32> to vector<16xf32>
    %122 = vector.shape_cast %121 : vector<16xf32> to vector<16x1xf32>
    %c0_45 = arith.constant 0 : index
    %c0_46 = arith.constant 0 : index
    %c0_47 = arith.constant 0 : index
    %123 = vector.load %arg5[%c0_45, %c0_46, %c0_47] : memref<1x16x1xf32, #tpu.memory_space<vmem>>, vector<1x16x1xf32>
    %124 = vector.shape_cast %123 : vector<1x16x1xf32> to vector<16x1xf32>
    %125 = vector.shape_cast %122 : vector<16x1xf32> to vector<1x16x1xf32>
    tpu.vector_store %arg5[%c0_45, %c0_46, %c0_47], %125 {strides = array<i32>} : memref<1x16x1xf32, #tpu.memory_space<vmem>>, vector<1x16x1xf32>,
    %126 = arith.mulf %117, %117 : vector<16x256xf32>
    %cst_48 = arith.constant dense<0.000000e+00> : vector<16xf32>
    %127 = vector.multi_reduction <add>, %126, %cst_48 [1] : vector<16x256xf32> to vector<16xf32>
    %128 = vector.shape_cast %127 : vector<16xf32> to vector<16x1xf32>
    %c0_49 = arith.constant 0 : index
    %c0_50 = arith.constant 0 : index
    %c0_51 = arith.constant 0 : index
    %129 = vector.load %arg6[%c0_49, %c0_50, %c0_51] : memref<1x16x1xf32, #tpu.memory_space<vmem>>, vector<1x16x1xf32>
    %130 = vector.shape_cast %129 : vector<1x16x1xf32> to vector<16x1xf32>
    %131 = vector.shape_cast %128 : vector<16x1xf32> to vector<1x16x1xf32>
    tpu.vector_store %arg6[%c0_49, %c0_50, %c0_51], %131 {strides = array<i32>} : memref<1x16x1xf32, #tpu.memory_space<vmem>>, vector<1x16x1xf32>,
    return
  }
  func.func @transform_0(%arg0: i32) -> (i32, i32, i32, i32) {
    %c0_i32 = arith.constant 0 : i32
    %c0_i32_0 = arith.constant 0 : i32
    %c0_i32_1 = arith.constant 0 : i32
    %c0_i32_2 = arith.constant 0 : i32
    return %arg0, %c0_i32, %c0_i32_0, %c0_i32_1 : i32, i32, i32, i32
  }
  func.func @transform_1(%arg0: i32) -> (i32, i32) {
    %c0_i32 = arith.constant 0 : i32
    %c0_i32_0 = arith.constant 0 : i32
    %c0_i32_1 = arith.constant 0 : i32
    return %c0_i32, %c0_i32_0 : i32, i32
  }
  func.func @transform_2(%arg0: i32) -> (i32, i32) {
    %c0_i32 = arith.constant 0 : i32
    %c0_i32_0 = arith.constant 0 : i32
    %c0_i32_1 = arith.constant 0 : i32
    return %c0_i32, %c0_i32_0 : i32, i32
  }
  func.func @transform_3(%arg0: i32) -> (i32, i32, i32) {
    %c0_i32 = arith.constant 0 : i32
    %c0_i32_0 = arith.constant 0 : i32
    %c0_i32_1 = arith.constant 0 : i32
    return %arg0, %c0_i32, %c0_i32_0 : i32, i32, i32
  }
  func.func @transform_4(%arg0: i32) -> (i32, i32, i32) {
    %c0_i32 = arith.constant 0 : i32
    %c0_i32_0 = arith.constant 0 : i32
    %c0_i32_1 = arith.constant 0 : i32
    return %arg0, %c0_i32, %c0_i32_0 : i32, i32, i32
  }
  func.func @transform_5(%arg0: i32) -> (i32, i32, i32) {
    %c0_i32 = arith.constant 0 : i32
    %c0_i32_0 = arith.constant 0 : i32
    %c0_i32_1 = arith.constant 0 : i32
    return %arg0, %c0_i32, %c0_i32_0 : i32, i32, i32
  }
}

module attributes {stable_mosaic.version = 11 : i64} {
  func.func @kernel(%arg0: i32, %arg1: memref<4xf32, #tpu.memory_space<smem>>, %arg2: memref<4xf32, #tpu.memory_space<smem>>, %arg3: memref<2x4x256xf32, #tpu.memory_space<vmem>>, %arg4: memref<2x4x256xf32, #tpu.memory_space<vmem>>, %arg5: memref<2x8x256xf32, #tpu.memory_space<vmem>>) attributes {dimension_semantics = [#tpu.dimension_semantics<parallel>], iteration_bounds = array<i64: 1>, scalar_prefetch = 0 : i64, scratch_operands = 0 : i64, tpu.core_type = #tpu.core_type<tc>, window_params = [{transform_indices = @transform_0, window_bounds = array<i64: 4>}, {transform_indices = @transform_1, window_bounds = array<i64: 4>}, {transform_indices = @transform_2, window_bounds = array<i64: 2, 4, 256>}, {transform_indices = @transform_3, window_bounds = array<i64: 2, 4, 256>}, {transform_indices = @transform_4, window_bounds = array<i64: 2, 8, 256>}]} {
    %c0 = arith.constant 0 : index
    %c0_0 = arith.constant 0 : index
    %c0_1 = arith.constant 0 : index
    %0 = vector.load %arg3[%c0, %c0_0, %c0_1] : memref<2x4x256xf32, #tpu.memory_space<vmem>>, vector<2x4x256xf32>
    %c0_2 = arith.constant 0 : index
    %c0_3 = arith.constant 0 : index
    %c0_4 = arith.constant 0 : index
    %1 = vector.load %arg5[%c0_2, %c0_3, %c0_4] : memref<2x8x256xf32, #tpu.memory_space<vmem>>, vector<2x4x256xf32>
    tpu.vector_store %arg5[%c0_2, %c0_3, %c0_4], %0 {strides = array<i32>} : memref<2x8x256xf32, #tpu.memory_space<vmem>>, vector<2x4x256xf32>,
    %c0_5 = arith.constant 0 : index
    %c0_6 = arith.constant 0 : index
    %c0_7 = arith.constant 0 : index
    %2 = vector.load %arg4[%c0_5, %c0_6, %c0_7] : memref<2x4x256xf32, #tpu.memory_space<vmem>>, vector<2x1x256xf32>
    %c0_8 = arith.constant 0 : index
    %3 = memref.load %arg1[%c0_8] : memref<4xf32, #tpu.memory_space<smem>>
    %4 = vector.broadcast %3 : f32 to vector<2x1x256xf32>
    %5 = arith.mulf %2, %4 : vector<2x1x256xf32>
    %c0_9 = arith.constant 0 : index
    %6 = memref.load %arg2[%c0_9] : memref<4xf32, #tpu.memory_space<smem>>
    %7 = vector.broadcast %6 : f32 to vector<2x1x256xf32>
    %8 = arith.addf %5, %7 : vector<2x1x256xf32>
    %c0_10 = arith.constant 0 : index
    %c1 = arith.constant 1 : index
    %c0_11 = arith.constant 0 : index
    %9 = vector.load %arg4[%c0_10, %c1, %c0_11] : memref<2x4x256xf32, #tpu.memory_space<vmem>>, vector<2x1x256xf32>
    %c1_12 = arith.constant 1 : index
    %10 = memref.load %arg1[%c1_12] : memref<4xf32, #tpu.memory_space<smem>>
    %11 = vector.broadcast %10 : f32 to vector<2x1x256xf32>
    %12 = arith.mulf %9, %11 : vector<2x1x256xf32>
    %c1_13 = arith.constant 1 : index
    %13 = memref.load %arg2[%c1_13] : memref<4xf32, #tpu.memory_space<smem>>
    %14 = vector.broadcast %13 : f32 to vector<2x1x256xf32>
    %15 = arith.addf %12, %14 : vector<2x1x256xf32>
    %c0_14 = arith.constant 0 : index
    %c2 = arith.constant 2 : index
    %c0_15 = arith.constant 0 : index
    %16 = vector.load %arg4[%c0_14, %c2, %c0_15] : memref<2x4x256xf32, #tpu.memory_space<vmem>>, vector<2x1x256xf32>
    %c2_16 = arith.constant 2 : index
    %17 = memref.load %arg1[%c2_16] : memref<4xf32, #tpu.memory_space<smem>>
    %18 = vector.broadcast %17 : f32 to vector<2x1x256xf32>
    %19 = arith.mulf %16, %18 : vector<2x1x256xf32>
    %c2_17 = arith.constant 2 : index
    %20 = memref.load %arg2[%c2_17] : memref<4xf32, #tpu.memory_space<smem>>
    %21 = vector.broadcast %20 : f32 to vector<2x1x256xf32>
    %22 = arith.addf %19, %21 : vector<2x1x256xf32>
    %c0_18 = arith.constant 0 : index
    %c3 = arith.constant 3 : index
    %c0_19 = arith.constant 0 : index
    %23 = vector.load %arg4[%c0_18, %c3, %c0_19] : memref<2x4x256xf32, #tpu.memory_space<vmem>>, vector<2x1x256xf32>
    %c3_20 = arith.constant 3 : index
    %24 = memref.load %arg1[%c3_20] : memref<4xf32, #tpu.memory_space<smem>>
    %25 = vector.broadcast %24 : f32 to vector<2x1x256xf32>
    %26 = arith.mulf %23, %25 : vector<2x1x256xf32>
    %c3_21 = arith.constant 3 : index
    %27 = memref.load %arg2[%c3_21] : memref<4xf32, #tpu.memory_space<smem>>
    %28 = vector.broadcast %27 : f32 to vector<2x1x256xf32>
    %29 = arith.addf %26, %28 : vector<2x1x256xf32>
    %30 = tpu.concatenate %8, %15, %22, %29 in 1 : vector<2x1x256xf32>, vector<2x1x256xf32>, vector<2x1x256xf32>, vector<2x1x256xf32> -> vector<2x4x256xf32>
    %c0_22 = arith.constant 0 : index
    %c4 = arith.constant 4 : index
    %c0_23 = arith.constant 0 : index
    %31 = vector.load %arg5[%c0_22, %c4, %c0_23] : memref<2x8x256xf32, #tpu.memory_space<vmem>>, vector<2x4x256xf32>
    tpu.vector_store %arg5[%c0_22, %c4, %c0_23], %30 {strides = array<i32>} : memref<2x8x256xf32, #tpu.memory_space<vmem>>, vector<2x4x256xf32>,
    return
  }
  func.func @transform_0(%arg0: i32) -> i32 {
    %c0_i32 = arith.constant 0 : i32
    %c0_i32_0 = arith.constant 0 : i32
    return %c0_i32 : i32
  }
  func.func @transform_1(%arg0: i32) -> i32 {
    %c0_i32 = arith.constant 0 : i32
    %c0_i32_0 = arith.constant 0 : i32
    return %c0_i32 : i32
  }
  func.func @transform_2(%arg0: i32) -> (i32, i32, i32) {
    %c0_i32 = arith.constant 0 : i32
    %c0_i32_0 = arith.constant 0 : i32
    %c0_i32_1 = arith.constant 0 : i32
    return %arg0, %c0_i32, %c0_i32_0 : i32, i32, i32
  }
  func.func @transform_3(%arg0: i32) -> (i32, i32, i32) {
    %c0_i32 = arith.constant 0 : i32
    %c0_i32_0 = arith.constant 0 : i32
    %c0_i32_1 = arith.constant 0 : i32
    return %arg0, %c0_i32, %c0_i32_0 : i32, i32, i32
  }
  func.func @transform_4(%arg0: i32) -> (i32, i32, i32) {
    %c0_i32 = arith.constant 0 : i32
    %c0_i32_0 = arith.constant 0 : i32
    %c0_i32_1 = arith.constant 0 : i32
    return %arg0, %c0_i32, %c0_i32_0 : i32, i32, i32
  }
}

</mosaic_0001>

<bundles_post_ra>
// kernel: seg_v2_block_forward.3
= control target key start
LH: loop header
LB: loop body
LE: loop exit
PB: predicated region body
PF: predicated region fallthrough
CT: control target
= control target key end

     0   :  { %9 = vsyncpa [#allocation3], 0  ;;  %s388_s0 = inlined_call_operand.vmem [shape: f32[4], index: 0, kind: input, shape index: {}]   ;;  %s389_s1 = inlined_call_operand.vmem [shape: f32[4], index: 1, kind: input, shape index: {}]   ;;  %s390_s2 = inlined_call_operand.vmem [shape: f32[2,4,256], index: 2, kind: input, shape index: {}]   ;;  %s391_s3 = inlined_call_operand.vmem [shape: f32[2,4,256], index: 3, kind: input, shape index: {}]   ;;  %s392_s4 = inlined_call_operand.vmem [shape: f32[2,8,256], index: 4, kind: output, shape index: {}]  }
   0x1   :  { %s17_s17 = sshll.u32 %s388_s0, 4  ;;  %s18_s17 = int_to_ptr.vmem [resolvable:$true] %s17_s17 }
   0x2   :  { %10 = vsyncpa [#allocation5], 0  ;;  %s27_s20 = sshll.u32 %s389_s1, 4  ;;  %s243_s21 = scalar_lea.vmem %s18_s17, 16  ;;  %s28_s20 = int_to_ptr.vmem [resolvable:$true] %s27_s20 }
   0x3   :  { %p244_p0 = scmp.ne.s32.totalorder %s18_s17, %s243_s21  ;;  %p248_p1 = scmp.lt.s32.totalorder %s18_s17, %s18_s17 }
   0x4   :  { %p249_p2 = scmp.lt.s32.totalorder %s243_s21, %s243_s21 }
   0x6   :  { %p250_p3 = por %p249_p2, %p248_p1 }
   0x8   :  { %p251_p4 = pnand %p250_p3, %p244_p0 }
   0xa   :  { %254 = shalt.err (!%p251_p4)
}
   0xb   :  { %s271_s22 = smov [#allocation2]   ;;  %s255_s23 = scalar_lea.vmem %s28_s20, 16 }
   0xc   :  { %20 = dma.vmem_to_smem %s18_s17, 16, %s271_s22, [#allocation3]  }
   0xd   :  { %p256_p5 = scmp.ne.s32.totalorder %s28_s20, %s255_s23  ;;  %p260_p6 = scmp.lt.s32.totalorder %s28_s20, %s28_s20 }
   0xe   :  { %p261_p7 = scmp.lt.s32.totalorder %s255_s23, %s255_s23 }
  0x10   :  { %p262_p8 = por %p261_p7, %p260_p6 }
  0x12   :  { %p263_p9 = pnand %p262_p8, %p256_p5 }
  0x14   :  { %266 = shalt.err (!%p263_p9)
}
  0x15   :  { %s272_s0 = smov [#allocation4]  }
  0x16   :  { %30 = dma.vmem_to_smem %s28_s20, 16, %s272_s0, [#allocation5]  }
  0x17   :  { %267 = dma.done.wait [#allocation3], 16  }
  0x18   :  { %268 = vsyncadd [#allocation3], 4294967280 }
  0x19   :  { %269 = dma.done.wait [#allocation5], 16  }
  0x1a   :  { %270 = vsyncadd [#allocation5], 4294967280 }
  0x1b   :  { %41 = sfence }
  0x1c   :  { %v42_v0 = vld [vmem:[%s390_s2] sm:$0xff]  ;;  %v43_v1 = vld [vmem:[%s390_s2 + $0x8] sm:$0xff]  ;;  %v103_v2 = vlaneseq  ;;  %s57_s5 = sld [smem:[#allocation2]]  ;;  %s229_s7 = sld [smem:[#allocation2 + $0x1]]  ;;  %vm189_vm0 = vcmask 1040384   ;;  %vm194_vm1 = vcmask 1041408  }
  0x1d   :  { %50 = vst [vmem:[%s392_s4] sm:$0xf] %v42_v0  ;;  %v46_v3 = vcombine.high %v42_v0, %v42_v0  ;;  %52 = vst [vmem:[%s392_s4 + $0x10] sm:$0xf] %v43_v1  ;;  %v47_v4 = vcombine.high %v43_v1, %v43_v1  ;;  %s316_s6 = sld [smem:[#allocation4]]  ;;  %s327_s13 = sld [smem:[#allocation4 + $0x1]]  ;;  %vm199_vm2 = vcmask 1042432  }
  0x1e   :  { %v54_v5 = vld [vmem:[%s391_s3] ss:$4 sm:$0x3]  ;;  %v104_v6 = vshrl.u32 %v103_v2, 7  ;;  %s329_s14 = sld [smem:[#allocation2 + $0x2]]  ;;  %s336_s18 = sld [smem:[#allocation2 + $0x3]] }
  0x1f   :  { %51 = vst [vmem:[%s392_s4 + $0x8] sm:$0xf] %v46_v3  ;;  %53 = vst [vmem:[%s392_s4 + $0x18] sm:$0xf] %v47_v4  ;;  %s331_s15 = sld [smem:[#allocation4 + $0x2]]  ;;  %s338_s19 = sld [smem:[#allocation4 + $0x3]] }
  0x20   :  { %v227_v7 = vld [vmem:[%s391_s3 + $0x1] ss:$4 sm:$0x3]  ;;  %v226_v8 = vld [vmem:[%s391_s3 + $0x8] ss:$4 sm:$0x3] }
  0x21   :  { %v105_v11 = vsub.s32 0, %v104_v6  ;;  %v228_v12 = vld [vmem:[%s391_s3 + $0x9] ss:$4 sm:$0x3]  ;;  %v109_v16 = vsub.s32 1, %v104_v6 }
  0x22   :  { %v58_v9 = vstv %s57_s5  ;;  %v70_v14 = vstv %s229_s7  ;;  %v231_v15 = vld [vmem:[%s391_s3 + $0x2] ss:$4 sm:$0x3]  ;;  %v235_v20 = vld [vmem:[%s391_s3 + $0x3] ss:$4 sm:$0x3] }
  0x23   :  { %v62_v10 = vstv %s316_s6  ;;  %v59_v13 = vmul.f32 %v58_v9, %v54_v5  ;;  %v60_v17 = vmul.f32 %v226_v8, %v58_v9  ;;  %v71_v18 = vmul.f32 %v227_v7, %v70_v14  ;;  %v232_v26 = vld [vmem:[%s391_s3 + $0xa] ss:$4 sm:$0x3]  ;;  %v236_v31 = vld [vmem:[%s391_s3 + $0xb] ss:$4 sm:$0x3] }
  0x24   :  { %v74_v19 = vstv %s327_s13  ;;  %v72_v21 = vmul.f32 %v228_v12, %v70_v14  ;;  %v82_v23 = vstv %s329_s14  ;;  %v94_v29 = vstv %s336_s18 }
  0x25   :  { %v63_v22 = vadd.f32 %v62_v10, %v59_v13  ;;  %v86_v24 = vstv %s331_s15  ;;  %v64_v25 = vadd.f32 %v62_v10, %v60_v17  ;;  %v75_v27 = vadd.f32 %v74_v19, %v71_v18 }
  0x26   :  { %v83_v28 = vmul.f32 %v231_v15, %v82_v23  ;;  %v76_v30 = vadd.f32 %v74_v19, %v72_v21  ;;  %v95_v32 = vmul.f32 %v235_v20, %v94_v29  ;;  %v98_v33 = vstv %s338_s19 }
  0x27   :  { %v106_v34 = vrot.slane %v63_v22, %v105_v11  ;;  %v110_v35 = vrot.slane %v63_v22, %v109_v16  ;;  %v128_v37 = vrot.slane %v75_v27, %v105_v11  ;;  %v132_v38 = vrot.slane %v75_v27, %v109_v16 }
  0x28   :  { %v87_v36 = vadd.f32 %v86_v24, %v83_v28  ;;  %v84_v39 = vmul.f32 %v232_v26, %v82_v23  ;;  %v99_v40 = vadd.f32 %v98_v33, %v95_v32  ;;  %v96_v41 = vmul.f32 %v236_v31, %v94_v29 }
  0x29   :  { %v114_v42 = vrot.slane %v64_v25, %v105_v11  ;;  %v136_v43 = vrot.slane %v76_v30, %v105_v11  ;;  %v190_v45 = vsel %vm189_vm0, %v106_v34, %v128_v37  ;;  %v191_v47 = vsel %vm189_vm0, %v110_v35, %v132_v38 }
  0x2a   :  { %v150_v44 = vrot.slane %v87_v36, %v105_v11  ;;  %v154_v46 = vrot.slane %v87_v36, %v109_v16  ;;  %v172_v48 = vrot.slane %v99_v40, %v105_v11  ;;  %v176_v49 = vrot.slane %v99_v40, %v109_v16 }
  0x2b   :  { %v88_v50 = vadd.f32 %v86_v24, %v84_v39  ;;  %v100_v51 = vadd.f32 %v98_v33, %v96_v41  ;;  %v192_v54 = vsel %vm189_vm0, %v114_v42, %v136_v43  ;;  %v118_v55 = vrot.slane %v64_v25, %v109_v16 }
  0x2c   :  { %v195_v52 = vsel %vm194_vm1, %v190_v45, %v150_v44  ;;  %v196_v53 = vsel %vm194_vm1, %v191_v47, %v154_v46  ;;  %v140_v62 = vrot.slane %v76_v30, %v109_v16 }
  0x2d   :  { %v200_v56 = vsel %vm199_vm2, %v195_v52, %v172_v48  ;;  %v201_v57 = vsel %vm199_vm2, %v196_v53, %v176_v49  ;;  %v158_v58 = vrot.slane %v88_v50, %v105_v11  ;;  %v180_v59 = vrot.slane %v100_v51, %v105_v11 }
  0x2e   :  { %v208_v60 = vrot.slane %v200_v56, 4  ;;  %v209_v61 = vrot.slane %v201_v57, 4  ;;  %v162_v63 = vrot.slane %v88_v50, %v109_v16  ;;  %v184_v1 = vrot.slane %v100_v51, %v109_v16 }
  0x2f   :  { %v197_v0 = vsel %vm194_vm1, %v192_v54, %v158_v58  ;;  %v193_v3 = vsel %vm189_vm0, %v118_v55, %v140_v62 }
  0x30   :  { %216 = vst [vmem:[%s392_s4] sm:$0xf0] %v208_v60  ;;  %217 = vst [vmem:[%s392_s4 + $0x8] sm:$0xf0] %v209_v61  ;;  %v202_v2 = vsel %vm199_vm2, %v197_v0, %v180_v59  ;;  %v198_v5 = vsel %vm194_vm1, %v193_v3, %v162_v63 }
  0x31   :  { %v210_v4 = vrot.slane %v202_v2, 4  ;;  %v203_v6 = vsel %vm199_vm2, %v198_v5, %v184_v1 }
  0x32   :  { %v211_v7 = vrot.slane %v203_v6, 4 }
  0x33   :  { %218 = vst [vmem:[%s392_s4 + $0x10] sm:$0xf0] %v210_v4 }
  0x34   :  { %219 = vst [vmem:[%s392_s4 + $0x18] sm:$0xf0] %v211_v7 }
  0x35   :  { %224 = vsyncpa [#allocation3], 1 }
  0x36   :  { %225 = vsyncpa [#allocation5], 1 }

// kernel: seg_v2_block_forward.2
= control target key start
LH: loop header
LB: loop body
LE: loop exit
PB: predicated region body
PF: predicated region fallthrough
CT: control target
= control target key end

     0   :  { %s568_s15 = smov 127   ;;  %s569_s18 = smov 119   ;;  %v570_v32 = vmov 0.0   ;;  %vm307_vm0 = vcmask 130048   ;;  %vm55_vm1 = vcmask 1039360   ;;  %vm94_vm2 = vcmask 973824   ;;  %s758_s0 = inlined_call_operand.vmem [shape: f32[2,4,8,144], index: 0, kind: input, shape index: {}]   ;;  %s759_s1 = inlined_call_operand.vmem [shape: f32[8,72], index: 1, kind: input, shape index: {}]   ;;  %s760_s2 = inlined_call_operand.vmem [shape: f32[16,32], index: 2, kind: input, shape index: {}]   ;;  %s761_s3 = inlined_call_operand.vmem [shape: f32[1,16,256], index: 3, kind: output, shape index: {0}]   ;;  %s762_s4 = inlined_call_operand.vmem [shape: f32[1,16,1], index: 4, kind: output, shape index: {1}]   ;;  %s763_s5 = inlined_call_operand.vmem [shape: f32[1,16,1], index: 5, kind: output, shape index: {2}]  }
   0x1   :  { %v606_v0 = vld [vmem:[%s758_s0 + $0x60] sm:$0xff]  ;;  %v29_v1 = vld [vmem:[%s758_s0 + $0x68] sm:$0xff]  ;;  %v26_v14 = vld [vmem:[%s758_s0 + $0x50] sm:$0xff]  ;;  %225 = vmatprep.mubr.f32.mxu0 %v570_v32  ;;  %308 = vst.msk [vmem:[#allocation3 + $0x10] sm:$0xff] %vm307_vm0, %v570_v32  ;;  %418 = vmatprep.mubr.f32.mxu1 %v570_v32  ;;  %s571_s19 = smov 118   ;;  %vm127_vm3 = vcmask 965632  }
   0x2   :  { %v24_v2 = vld [vmem:[%s758_s0 + $0x40] sm:$0xff]  ;;  %v42_v3 = vmax.f32 %v606_v0, 0.0  ;;  %v43_v4 = vmax.f32 %v29_v1, 0.0  ;;  %v25_v5 = vld [vmem:[%s758_s0 + $0x48] sm:$0xff]  ;;  %v27_v18 = vld [vmem:[%s758_s0 + $0x58] sm:$0xff]  ;;  %v40_v21 = vmax.f32 %v26_v14, 0.0 }
   0x3   :  { %v38_v6 = vmax.f32 %v24_v2, 0.0  ;;  %v621_v7 = vld [vmem:[%s758_s0 + $0x20] sm:$0xff]  ;;  %v22_v8 = vld [vmem:[%s758_s0 + $0x28] sm:$0xff]  ;;  %v39_v9 = vmax.f32 %v25_v5, 0.0  ;;  %v19_v19 = vld [vmem:[%s758_s0 + $0x10] sm:$0xff]  ;;  %v41_v23 = vmax.f32 %v27_v18, 0.0  ;;  %v232_v18 = vlaneseq }
   0x4   :  { %v35_v10 = vmax.f32 %v621_v7, 0.0  ;;  %v36_v11 = vmax.f32 %v22_v8, 0.0  ;;  %v17_v12 = vld [vmem:[%s758_s0] sm:$0xff]  ;;  %v18_v13 = vld [vmem:[%s758_s0 + $0x8] sm:$0xff]  ;;  %v517_v15 = vpack.i.bf16 %v43_v4, %v42_v3  ;;  %v33_v24 = vmax.f32 %v19_v19, 0.0  ;;  %v20_v26 = vld [vmem:[%s758_s0 + $0x18] sm:$0xff] }
   0x5   :  { %v31_v16 = vmax.f32 %v17_v12, 0.0  ;;  %v32_v17 = vmax.f32 %v18_v13, 0.0  ;;  %v507_v20 = vpack.i.bf16 %v39_v9, %v38_v6  ;;  %v475_v27 = vpack.c.bf16 %v40_v21, %v38_v6  ;;  %v30_v37 = vld [vmem:[%s758_s0 + $0x70] sm:$0xff] }
   0x6   :  { %518 = vrot.lane.b32.xlu1 %v517_v15, %s568_s15  ;;  %v522_v22 = vpack.i.bf16 %v36_v11, %v35_v10  ;;  %v532_v29 = vpack.i.bf16 %v41_v23, %v40_v21  ;;  %v34_v30 = vmax.f32 %v20_v26, 0.0  ;;  %v44_v44 = vmax.f32 %v30_v37, 0.0  ;;  %v23_v49 = vld [vmem:[%s758_s0 + $0x30] sm:$0xff] }
   0x7   :  { %508 = vrot.lane.b32.xlu0 %v507_v20, %s568_s15  ;;  %v512_v25 = vpack.i.bf16 %v32_v17, %v31_v16  ;;  %v477_v28 = vpack.c.bf16 %v33_v24, %v31_v16  ;;  %476 = vmatprep.subr.bf16.mxu0 %v475_v27  ;;  %v37_v57 = vmax.f32 %v23_v49, 0.0  ;;  %vm157_vm4 = vcmask 588800  }
   0x8   :  { %v542_v31 = vpack.i.bf16 %v34_v30, %v33_v24  ;;  %v233_v19 = vand.u32 127, %v232_v18 }
   0x9   :  { %478 = vmatpush1.bf16.msra.mxu0 %v477_v28 }
   0xa   :  { %523 = vrot.lane.b32.xlu1 %v522_v22, %s568_s15  ;;  %v683_v22 = vmul.u32.u64.low 3817748708, %v233_v19  ;;  %v684_v23 = vmul.u32.u64.high 3817748708, %v233_v19, %v683_v22  ;;  %vm293_vm12 = vcmp.lt.s32.totalorder %v233_v19, 72 }
   0xb   :  { %513 = vrot.lane.b32.xlu0 %v512_v25, %s568_s15 }
   0xc   :  { %v265_v26 = vshrl.u32 %v684_v23, 3 }
   0xe   :  { %533 = vrot.lane.b32.xlu1 %v532_v29, %s569_s18  ;;  %v266_v28 = vmul.u32 9, %v265_v26 }
   0xf   :  { %528 = vrot.lane.b32.xlu0 %v507_v20, %s569_s18  ;;  %v234_v20 = vadd.s32 128, %v233_v19 }
  0x10   :  { %v267_v30 = vsub.s32 %v233_v19, %v266_v28 }
  0x11   :  { %v246_v21 = vand.u32 127, %v234_v20 }
  0x12   :  { %543 = vrot.lane.b32.xlu1 %v542_v31, %s569_s18  ;;  %vm281_vm5 = vcmp.ne.s32.totalorder %v267_v30, 0  ;;  %vm283_vm6 = vcmp.lt.s32.totalorder %v267_v30, 0 }
  0x13   :  { %538 = vrot.lane.b32.xlu0 %v512_v25, %s569_s18  ;;  %v686_v24 = vmul.u32.u64.low 3817748708, %v246_v21  ;;  %v687_v25 = vmul.u32.u64.high 3817748708, %v246_v21, %v686_v24  ;;  %vm285_vm9 = vmand %vm283_vm6, %vm281_vm5  ;;  %vm294_vm14 = vcmp.lt.s32.totalorder %v246_v21, 72 }
  0x15   :  { %v276_v27 = vshrl.u32 %v687_v25, 3 }
  0x16   :  { %132 = vrot.lane.b32.xlu1 %v39_v9, %s571_s19 }
  0x17   :  { %130 = vrot.lane.b32.xlu0 %v38_v6, %s571_s19  ;;  %v277_v29 = vmul.u32 9, %v276_v27 }
  0x19   :  { %v278_v31 = vsub.s32 %v246_v21, %v277_v29 }
  0x1a   :  { %125 = vrot.lane.b32.xlu1 %v32_v17, %s571_s19 }
  0x1b   :  { %123 = vrot.lane.b32.xlu0 %v31_v16, %s571_s19  ;;  %v138_v16 = vld [vmem:[%s759_s1] sm:$0xff]  ;;  %vm282_vm7 = vcmp.ne.s32.totalorder %v278_v31, 0  ;;  %vm284_vm8 = vcmp.lt.s32.totalorder %v278_v31, 0 }
  0x1c   :  { %vm286_vm10 = vmand %vm284_vm8, %vm282_vm7 }
  0x78   :  { %v519_v33 = vpop.permute.xlu1 %518 }
  0x79   :  { %v509_v34 = vpop.permute.xlu0 %508  ;;  %v521_v38 = vunpack.i.h.bf16 %v519_v33  ;;  %v520_v39 = vunpack.i.l.bf16 %v519_v33  ;;  %v287_v33 = vadd.s32 9, %v267_v30 }
  0x7a   :  { %v511_v35 = vunpack.i.h.bf16 %v509_v34  ;;  %v510_v36 = vunpack.i.l.bf16 %v509_v34  ;;  %v288_v34 = vadd.s32 9, %v278_v31 }
  0x7b   :  { %v86_v50 = vsel %vm55_vm1, %v520_v39, %v521_v38 }
  0x7c   :  { %v524_v40 = vpop.permute.xlu1 %523  ;;  %v64_v41 = vsel %vm55_vm1, %v510_v36, %v511_v35  ;;  %v483_v60 = vpack.c.bf16 %v86_v50, %v44_v44  ;;  %v289_v35 = vsel %vm285_vm9, %v287_v33, %v267_v30  ;;  %v290_v36 = vsel %vm286_vm10, %v288_v34, %v278_v31 }
  0x7d   :  { %v514_v42 = vpop.permute.xlu0 %513  ;;  %v479_v43 = vpack.c.bf16 %v42_v3, %v64_v41  ;;  %v526_v45 = vunpack.i.h.bf16 %v524_v40  ;;  %v525_v46 = vunpack.i.l.bf16 %v524_v40  ;;  %vm291_vm11 = vcmp.ne.s32.totalorder %v289_v35, 8 }
  0x7e   :  { %v516_v47 = vunpack.i.h.bf16 %v514_v42  ;;  %v515_v48 = vunpack.i.l.bf16 %v514_v42  ;;  %vm292_vm13 = vcmp.ne.s32.totalorder %v290_v36, 8  ;;  %vm691_vm15 = vmand %vm291_vm11, %vm293_vm12 }
  0x7f   :  { %480 = vmatprep.subr.bf16.mxu0 %v479_v43  ;;  %v78_v61 = vsel %vm55_vm1, %v525_v46, %v526_v45  ;;  %vm695_vm0 = vmand %vm292_vm13, %vm294_vm14  ;;  %v311_v43 = vld [vmem:[#allocation3 + $0x10] sm:$0xff] }
  0x80   :  { %v534_v51 = vpop.permute.xlu1 %533  ;;  %v56_v52 = vsel %vm55_vm1, %v515_v48, %v516_v47  ;;  %v485_v4 = vpack.c.bf16 %v78_v61, %v37_v57 }
  0x81   :  { %v536_v53 = vunpack.i.h.bf16 %v534_v51  ;;  %v535_v54 = vunpack.i.l.bf16 %v534_v51  ;;  %v529_v55 = vpop.permute.xlu0 %528  ;;  %v481_v56 = vpack.c.bf16 %v35_v10, %v56_v52 }
  0x82   :  { %v531_v58 = vunpack.i.h.bf16 %v529_v55  ;;  %v530_v59 = vunpack.i.l.bf16 %v529_v55 }
  0x83   :  { %482 = vmatpush1.bf16.msra.mxu0 %v481_v56  ;;  %v119_v62 = vsel %vm94_vm2, %v535_v54, %v536_v53 }
  0x84   :  { %484 = vmatprep.subr.bf16.mxu0 %v483_v60  ;;  %v544_v63 = vpop.permute.xlu1 %543  ;;  %v101_v0 = vsel %vm94_vm2, %v530_v59, %v531_v58 }
  0x85   :  { %v546_v1 = vunpack.i.h.bf16 %v544_v63  ;;  %v545_v2 = vunpack.i.l.bf16 %v544_v63  ;;  %v539_v3 = vpop.permute.xlu0 %538  ;;  %v487_v5 = vpack.c.bf16 %v119_v62, %v101_v0 }
  0x86   :  { %v541_v6 = vunpack.i.h.bf16 %v539_v3  ;;  %v540_v7 = vunpack.i.l.bf16 %v539_v3 }
  0x87   :  { %486 = vmatpush1.bf16.msra.mxu0 %v485_v4  ;;  %v111_v8 = vsel %vm94_vm2, %v545_v2, %v546_v1 }
  0x88   :  { %488 = vmatprep.subr.bf16.mxu0 %v487_v5  ;;  %v133_v9 = vpop.permute.xlu1 %132  ;;  %v95_v10 = vsel %vm94_vm2, %v540_v7, %v541_v6  ;;  %v345_v5 = vld [vmem:[%s760_s2] sm:$0xff]  ;;  %v346_v6 = vld [vmem:[%s760_s2 + $0x8] sm:$0xff] }
  0x89   :  { %v131_v11 = vpop.permute.xlu0 %130  ;;  %v489_v12 = vpack.c.bf16 %v111_v8, %v95_v10 }
  0x8a   :  { %v134_v13 = vsel %vm127_vm3, %v131_v11, %v133_v9 }
  0x8b   :  { %490 = vmatpush1.bf16.msra.mxu0 %v489_v12 }
  0x8c   :  { %177 = vmatprep.subr.mxu0 %v134_v13  ;;  %v126_v14 = vpop.permute.xlu1 %125 }
  0x8d   :  { %v124_v15 = vpop.permute.xlu0 %123 }
  0x8e   :  { %v128_v17 = vsel %vm127_vm3, %v124_v15, %v126_v14 }
  0x8f   :  { %178 = vmatpush1.msra.mxu0 %v128_v17 }
  0x90   :  { %472 = vmatmul.mubr.msk.f32.vlgmr.msra.gmra.mrb[0].mxu0 %vm157_vm4, %v138_v16  ;;  %vm572_vm4 = vmmov 1  }
  0x91   :  { %vm562_vm5 = vmpackc.low %vm572_vm4, %vm695_vm0 }
  0x92   :  { %vm565_vm6 = vmpackc.low %vm572_vm4, %vm691_vm15 }
 0x163   :  { %v227_v37 = vpop.f32.mrb[0].mxu0 }
 0x164   :  { %v297_v39 = vmax.f32 %v227_v37, 0.0  ;;  %v229_v40 = vpop.f32.mrb[1].mxu0 }
 0x165   :  { %v298_v42 = vmax.f32 %v229_v40, 0.0 }
 0x166   :  { %v303_v44 = vsel %vm691_vm15, %v297_v39, 0.0 }
 0x167   :  { %v304_v45 = vsel %vm695_vm0, %v298_v42, 0.0  ;;  %315 = vrot.lane.b32.xlu1 %v303_v44, %s568_s15 }
 0x168   :  { %v547_v46 = vpack.i.bf16 %v311_v43, %v304_v45 }
 0x16a   :  { %548 = vrot.lane.b32.xlu0 %v547_v46, %s568_s15 }
 0x16b   :  { %558 = vrot.lane.b32.xlu1 %v547_v46, %s571_s19 }
 0x16e   :  { %553 = vrot.lane.b32.xlu0 %v547_v46, %s569_s18 }
 0x16f   :  { %335 = vrot.lane.b32.xlu1 %v303_v44, %s571_s19 }
 0x172   :  { %325 = vrot.lane.b32.xlu0 %v303_v44, %s569_s18 }
 0x1d9   :  { %v316_v47 = vpop.permute.xlu1 %315 }
 0x1dc   :  { %v549_v48 = vpop.permute.xlu0 %548 }
 0x1dd   :  { %v551_v49 = vunpack.i.h.bf16 %v549_v48  ;;  %v550_v50 = vunpack.i.l.bf16 %v549_v48  ;;  %v559_v51 = vpop.permute.xlu1 %558 }
 0x1de   :  { %v561_v52 = vunpack.i.h.bf16 %v559_v51  ;;  %v560_v53 = vunpack.i.l.bf16 %v559_v51 }
 0x1df   :  { %v322_v54 = vsel %vm55_vm1, %v550_v50, %v551_v49  ;;  %v321_v55 = vsel %vm55_vm1, %v316_v47, %v550_v50  ;;  %vm347_vm1 = vcmask 261120  }
 0x1e0   :  { %v554_v56 = vpop.permute.xlu0 %553  ;;  %v563_v60 = vpack.c.bf16 %v322_v54, %v298_v42  ;;  %v566_v61 = vpack.c.bf16 %v321_v55, %v297_v39  ;;  %v342_v63 = vsel %vm127_vm3, %v560_v53, %v561_v52 }
 0x1e1   :  { %v556_v57 = vunpack.i.h.bf16 %v554_v56  ;;  %v555_v58 = vunpack.i.l.bf16 %v554_v56  ;;  %v336_v59 = vpop.permute.xlu1 %335 }
 0x1e2   :  { %564 = vmatprep.subr.msk.bf16.mxu1 %vm562_vm5, %v563_v60  ;;  %v341_v2 = vsel %vm127_vm3, %v336_v59, %v560_v53 }
 0x1e3   :  { %567 = vmatpush1.bf16.msk.msra.mxu1 %vm565_vm6, %v566_v61  ;;  %v332_v62 = vsel %vm94_vm2, %v555_v58, %v556_v57 }
 0x1e4   :  { %v326_v0 = vpop.permute.xlu0 %325  ;;  %v495_v1 = vpack.c.bf16 %v342_v63, %v332_v62 }
 0x1e5   :  { %v331_v3 = vsel %vm94_vm2, %v326_v0, %v555_v58  ;;  %vm445_vm2 = vcmask 7168  }
 0x1e6   :  { %v497_v4 = vpack.c.bf16 %v341_v2, %v331_v3  ;;  %496 = vmatprep.subr.bf16.mxu1 %v495_v1 }
 0x1e8   :  { %498 = vmatpush1.bf16.msra.mxu1 %v497_v4 }
 0x1eb   :  { %473 = vmatmul.mubr.msk.f32.vlgmr.msra.gmra.mrb[0].mxu1 %vm347_vm1, %v345_v5 }
 0x1ec   :  { %424 = vmatprep.mubr.f32.mxu1 %v570_v32 }
 0x1ef   :  { %474 = vmatmul.mubr.msk.f32.gmra.mrb[2].mxu1 %vm347_vm1, %v346_v6 }
 0x2be   :  { %v420_v7 = vpop.f32.mrb[0].mxu1 }
 0x2bf   :  { %v431_v8 = vsel %vm691_vm15, %v420_v7, 0.0  ;;  %v422_v9 = vpop.f32.mrb[1].mxu1 }
 0x2c0   :  { %435 = vst [vmem:[%s761_s3] sm:$0xff] %v431_v8  ;;  %v448_v10 = vmul.f32 %v431_v8, %v431_v8  ;;  %v432_v11 = vsel %vm695_vm0, %v422_v9, 0.0 }
 0x2c1   :  { %436 = vst [vmem:[%s761_s3 + $0x8] sm:$0xff] %v432_v11  ;;  %v449_v32 = vmul.f32 %v432_v11, %v432_v11  ;;  %v439_v12 = vadd.f32 %v432_v11, %v431_v8 }
 0x2c2   :  { %v426_v13 = vpop.f32.mrb[2].mxu1 }
 0x2c3   :  { %440 = vadd.xlane.f32.xlu0 %v439_v12  ;;  %v433_v14 = vsel %vm691_vm15, %v426_v13, 0.0  ;;  %v428_v15 = vpop.f32.mrb[3].mxu1  ;;  %v452_v16 = vadd.f32 %v449_v32, %v448_v10 }
 0x2c4   :  { %437 = vst [vmem:[%s761_s3 + $0x10] sm:$0xff] %v433_v14  ;;  %v450_v17 = vmul.f32 %v433_v14, %v433_v14  ;;  %v434_v18 = vsel %vm695_vm0, %v428_v15, 0.0 }
 0x2c5   :  { %438 = vst [vmem:[%s761_s3 + $0x18] sm:$0xff] %v434_v18  ;;  %v451_v19 = vmul.f32 %v434_v18, %v434_v18  ;;  %v442_v20 = vadd.f32 %v434_v18, %v433_v14 }
 0x2c7   :  { %453 = vadd.xlane.f32.xlu0 %v452_v16  ;;  %443 = vadd.xlane.f32.xlu1 %v442_v20  ;;  %v455_v21 = vadd.f32 %v451_v19, %v450_v17 }
 0x2cb   :  { %456 = vadd.xlane.f32.xlu0 %v455_v21 }
 0x350   :  { %v441_v22 = vpop.xlane.xlu0 %440 }
 0x351   :  { %446 = vst.msk [vmem:[%s762_s4] sm:$0xff] %vm445_vm2, %v441_v22 }
 0x354   :  { %v454_v23 = vpop.xlane.xlu0 %453  ;;  %v444_v24 = vpop.xlane.xlu1 %443 }
 0x355   :  { %458 = vst.msk [vmem:[%s763_s5] sm:$0xff] %vm445_vm2, %v454_v23  ;;  %447 = vst.msk [vmem:[%s762_s4 + $0x8] sm:$0xff] %vm445_vm2, %v444_v24 }
 0x358   :  { %v457_v25 = vpop.xlane.xlu0 %456 }
 0x359   :  { %459 = vst.msk [vmem:[%s763_s5 + $0x8] sm:$0xff] %vm445_vm2, %v457_v25 }

</bundles_post_ra>
